<compile_context>
chip_gen: v7x
topology: tpu7x:2x2x1
jax: 0.10.0
libtpu: 0.0.40
codegen_flags: <defaults>
</compile_context>

<pallas_src>
import functools

import jax
import jax.numpy as jnp
from jax.experimental import pallas as pl
from jax.experimental.pallas import tpu as pltpu

_PAD = 2  # vertical halo rows above/below: covers the 5x5 (reach 2) and 3x3 (reach 1)


def _round_up(v, m):
    return (v + m - 1) // m * m


# ---------------------------------------------------------------------------
# One-time probe: does pltpu.roll follow the jnp.roll convention
# (result[i] == x[i - shift])?  Used to pick the rotate sign for the kernel.
# ---------------------------------------------------------------------------
def _roll_is_numpy_convention():
    def k(x_ref, o_ref):
        o_ref[...] = pltpu.roll(x_ref[...], 1, axis=1)

    x = jnp.arange(8 * 128, dtype=jnp.float32).reshape(8, 128)
    y = pl.pallas_call(k, out_shape=jax.ShapeDtypeStruct((8, 128), jnp.float32))(x)
    return bool(jnp.array_equal(jax.block_until_ready(y), jnp.roll(x, 1, axis=1)))


# ---------------------------------------------------------------------------
# Fused kernel builder
# ---------------------------------------------------------------------------
def _build_kernel(H, W, P, L_img, B, shortcut, roll_np_like):
    """GhostConv -> DWConv -> GhostConv -> residual, all in VMEM/vregs.

    Canvas layout: per image, Hp = H + 2P rows of width W, flattened row-major onto the
    lane axis and padded to L_img lanes (multiple of 128); B images are concatenated
    along lanes.  A tap (dh, dw) is a constant lane rotation by dh*W + dw; vertical
    out-of-range reads land in the zeroed halo rows / tails, horizontal out-of-range
    reads are killed by a per-dw column mask applied BEFORE the row shift.
    """
    Hp = H + 2 * P
    HW = H * W
    BL = B * L_img
    # Static guards for the wrap-free shift argument (review correctness concern).
    assert P >= 2, "vertical halo must cover the 5x5 tap reach"
    assert L_img % 128 == 0 and L_img >= Hp * W
    assert 2 * W + 2 < L_img, "tap offset must be smaller than one image canvas"

    def kernel(x_ref, masks_ref, w1_ref, b1_ref, w2_ref, b2_ref, w3_ref, b3_ref,
               w4_ref, b4_ref, w5_ref, b5_ref, o_ref):
        f32 = jnp.float32

        # Masks: rows 0..4 = column masks for dw = -2..2, row 5 = interior mask.
        masks = masks_ref[...].astype(f32)                 # (6, BL)
        colmask = [masks[i:i + 1, :] for i in range(5)]
        interior = masks[5:6, :]

        def silu(v):
            return v * jax.nn.sigmoid(v)

        def lroll(v, off):
            # s[:, i] = v[:, (i + off) % BL]  (left rotation by `off`), single XLU op.
            if off % BL == 0:
                return v
            s = (-off) % BL if roll_np_like else off % BL
            return pltpu.roll(v, s, axis=1)

        def pointwise(xs_list, w, b, n_chains=4):
            # 1x1 conv (+ folded BN bias + SiLU) as VPU broadcast-FMAs over lane-dense rows.
            rows = []
            for xin in xs_list:
                for ci in range(xin.shape[0]):
                    rows.append(xin[ci:ci + 1, :])
            assert w.shape[1] == len(rows)
            accs = [None] * max(1, min(n_chains, len(rows)))
            for ci, r in enumerate(rows):
                t = w[:, ci:ci + 1] * r
                k = ci % len(accs)
                accs[k] = t if accs[k] is None else accs[k] + t
            acc = accs[0]
            for a in accs[1:]:
                acc = acc + a
            return silu(acc + b)

        def spatial_conv(xin, w, b, K, depthwise, n_chains=4):
            # KxK conv, pad = K//2.  xin must be zero on halo rows and image tails.
            cin = xin.shape[0]
            R = K // 2
            if not depthwise:
                assert w.shape[1] == cin * K * K
            # Horizontally shifted + column-masked copies, one per kw offset (reused
            # across all kh rows).
            hs = []
            for dw in range(-R, R + 1):
                v = lroll(xin, dw)
                if dw != 0:
                    v = v * colmask[dw + 2]
                hs.append(v)
            accs = [None] * n_chains
            t_idx = 0
            for kh in range(K):
                for kw in range(K):
                    xs = lroll(hs[kw], (kh - R) * W)       # pure row shift (no wrap for interior)
                    if depthwise:
                        col = kh * K + kw
                        terms = [w[:, col:col + 1] * xs]
                    else:
                        terms = [w[:, ci * K * K + kh * K + kw: ci * K * K + kh * K + kw + 1]
                                 * xs[ci:ci + 1, :] for ci in range(cin)]
                    for t in terms:
                        k = t_idx % n_chains
                        accs[k] = t if accs[k] is None else accs[k] + t
                        t_idx += 1
            acc = None
            for a in accs:
                if a is not None:
                    acc = a if acc is None else acc + a
            return silu(acc + b)

        def place(flats):
            # Per-image dense (c, HW) -> packed canvas (c, BL) with zero halos & tails.
            pieces = []
            for fb in flats:
                c = fb.shape[0]
                pieces.append(jnp.zeros((c, P * W), f32))
                pieces.append(fb)
                pieces.append(jnp.zeros((c, L_img - (P + H) * W), f32))
            return jnp.concatenate(pieces, axis=1)

        # Load everything once per grid step.
        x = x_ref[...].astype(f32)                          # (B, c1, HW)
        w1 = w1_ref[...].astype(f32); b1 = b1_ref[...].astype(f32)
        w2 = w2_ref[...].astype(f32); b2 = b2_ref[...].astype(f32)
        w3 = w3_ref[...].astype(f32); b3 = b3_ref[...].astype(f32)
        w4 = w4_ref[...].astype(f32); b4 = b4_ref[...].astype(f32)
        w5 = w5_ref[...].astype(f32); b5 = b5_ref[...].astype(f32)

        xc = place([x[bb] for bb in range(B)])              # (c1, BL)

        # GhostConv(c1, c_): y = cat(cv1(x), cv2(cv1(x)))
        y1 = pointwise([xc], w1, b1) * interior             # re-zero halo before 5x5 / dw
        y2 = spatial_conv(y1, w2, b2, K=5, depthwise=False) * interior

        # DWConv(c_, c_, 3): depthwise -> run on the two ghost halves (no sublane concat)
        h = y1.shape[0]
        d1 = spatial_conv(y1, w3[:h], b3[:h], K=3, depthwise=True)
        d2 = spatial_conv(y2, w3[h:], b3[h:], K=3, depthwise=True)

        # GhostConv(c_, c2): z = cat(cv1(d), cv2(cv1(d)))
        z1 = pointwise([d1, d2], w4, b4) * interior
        z2 = spatial_conv(z1, w5, b5, K=5, depthwise=False)

        # Dense interior extraction + residual + direct per-half stores (lane-dense).
        co1 = z1.shape[0]
        for bb in range(B):
            lo = bb * L_img + P * W
            z1b = z1[:, lo:lo + HW]
            z2b = z2[:, lo:lo + HW]
            if shortcut:
                z1b = z1b + x[bb, :co1, :]
                z2b = z2b + x[bb, co1:, :]
            o_ref[bb, :co1, :] = z1b.astype(o_ref.dtype)
            o_ref[bb, co1:, :] = z2b.astype(o_ref.dtype)

    return kernel


def _build_masks(B, L_img, H, W, P):
    lane = jnp.arange(B * L_img, dtype=jnp.int32)
    r = lane % L_img
    row = r // W
    col = r % W
    rows = []
    for dw in (-2, -1, 0, 1, 2):
        rows.append(((col + dw >= 0) & (col + dw < W)).astype(jnp.float32))
    rows.append(((row >= P) & (row < P + H)).astype(jnp.float32))
    return jnp.stack(rows, axis=0)                          # (6, B*L_img)


# ---------------------------------------------------------------------------
# Wrapper: NCHW in -> fused kernel -> NCHW out (reshapes only, no pad/slice copies)
# ---------------------------------------------------------------------------
def ghost_bottleneck(x_nchw, params, shortcut, *, images_per_step=1, roll_np_like=True):
    N, c1, H, W = x_nchw.shape
    B = int(images_per_step)
    assert N % B == 0, "images_per_step must divide the batch"
    P = _PAD
    Hp = H + 2 * P
    HW = H * W
    L_img = _round_up(Hp * W, 128)
    dtype = x_nchw.dtype

    x_flat = x_nchw.reshape(N, c1, HW)                      # free (minor-dim merge)
    masks = _build_masks(B, L_img, H, W, P)

    p = params
    w1, b1 = p["g1_cv1"]["w"], p["g1_cv1"]["b"]
    w2, b2 = p["g1_cv2"]["w"], p["g1_cv2"]["b"]
    w3, b3 = p["dw"]["w"], p["dw"]["b"]
    w4, b4 = p["g2_cv1"]["w"], p["g2_cv1"]["b"]
    w5, b5 = p["g2_cv2"]["w"], p["g2_cv2"]["b"]
    c2 = w4.shape[0] + w5.shape[0]
    if shortcut:
        assert c1 == c2

    def const(a):  # tiny parameter tensors: full-array block, constant index map
        return pl.BlockSpec(a.shape, lambda n: (0,) * a.ndim)

    out_flat = pl.pallas_call(
        _build_kernel(H, W, P, L_img, B, shortcut, roll_np_like),
        out_shape=jax.ShapeDtypeStruct((N, c2, HW), dtype),
        grid_spec=pltpu.PrefetchScalarGridSpec(
            num_scalar_prefetch=0,
            grid=(N // B,),
            in_specs=[
                pl.BlockSpec((B, c1, HW), lambda n: (n, 0, 0)),
                const(masks),
                const(w1), const(b1), const(w2), const(b2),
                const(w3), const(b3), const(w4), const(b4),
                const(w5), const(b5),
            ],
            out_specs=pl.BlockSpec((B, c2, HW), lambda n: (n, 0, 0)),
        ),
        compiler_params=pltpu.CompilerParams(
            dimension_semantics=("parallel",)),
    )(x_flat, masks, w1, b1, w2, b2, w3, b3, w4, b4, w5, b5)

    return out_flat.reshape(N, c2, H, W)                    # free (minor-dim split)


# ---------------------------------------------------------------------------
# Deterministic synthetic parameters (eval-mode BN folded into the weights)
# ---------------------------------------------------------------------------
def _make_conv(key, cin, cout, k, depthwise=False, eps=1e-5):
    k1, k2, k3, k4, k5 = jax.random.split(key, 5)
    cin_g = 1 if depthwise else cin
    w = jax.random.normal(k1, (cout, cin_g, k, k), jnp.float32) * 0.2   # PyTorch OIHW
    gamma = jax.random.uniform(k2, (cout,), jnp.float32, 0.5, 1.5)
    beta = jax.random.normal(k3, (cout,), jnp.float32) * 0.1
    mean = jax.random.normal(k4, (cout,), jnp.float32) * 0.1
    var = jax.random.uniform(k5, (cout,), jnp.float32, 0.5, 1.5)
    scale = gamma / jnp.sqrt(var + eps)
    bias = beta - mean * scale
    w_folded = (w * scale[:, None, None, None]).reshape(cout, cin_g * k * k)
    return dict(w=w_folded, b=bias.reshape(cout, 1))


def init_ghost_bottleneck_params(key, c1, c2):
    c_ = c2 // 2
    ks = jax.random.split(key, 5)
    return {
        # GhostConv(c1, c_): cv1 = Conv(c1, c_//2, 1), cv2 = Conv(c_//2, c_//2, 5)
        "g1_cv1": _make_conv(ks[0], c1, c_ // 2, 1),
        "g1_cv2": _make_conv(ks[1], c_ // 2, c_ // 2, 5),
        # DWConv(c_, c_, 3, 1): depthwise 3x3
        "dw": _make_conv(ks[2], c_, c_, 3, depthwise=True),
        # GhostConv(c_, c2): cv1 = Conv(c_, c2//2, 1), cv2 = Conv(c2//2, c2//2, 5)
        "g2_cv1": _make_conv(ks[3], c_, c2 // 2, 1),
        "g2_cv2": _make_conv(ks[4], c2 // 2, c2 // 2, 5),
    }


# ---------------------------------------------------------------------------
# Pure-JAX/XLA reference (same folded parameters) for a correctness check
# ---------------------------------------------------------------------------
def _ref_conv_bn_silu(x, w2d, b, k, groups=1):
    cout = w2d.shape[0]
    cin_g = w2d.shape[1] // (k * k)
    w4 = w2d.reshape(cout, cin_g, k, k)
    y = jax.lax.conv_general_dilated(
        x, w4, window_strides=(1, 1),
        padding=[(k // 2, k // 2), (k // 2, k // 2)],
        dimension_numbers=("NCHW", "OIHW", "NCHW"),
        feature_group_count=groups,
        precision=jax.lax.Precision.HIGHEST)
    y = y + b.reshape(1, cout, 1, 1)
    return y * jax.nn.sigmoid(y)


def ghost_bottleneck_reference(x, p, shortcut):
    y1 = _ref_conv_bn_silu(x, p["g1_cv1"]["w"], p["g1_cv1"]["b"], 1)
    y2 = _ref_conv_bn_silu(y1, p["g1_cv2"]["w"], p["g1_cv2"]["b"], 5)
    y = jnp.concatenate([y1, y2], axis=1)
    d = _ref_conv_bn_silu(y, p["dw"]["w"], p["dw"]["b"], 3, groups=y.shape[1])
    z1 = _ref_conv_bn_silu(d, p["g2_cv1"]["w"], p["g2_cv1"]["b"], 1)
    z2 = _ref_conv_bn_silu(z1, p["g2_cv2"]["w"], p["g2_cv2"]["b"], 5)
    z = jnp.concatenate([z1, z2], axis=1)
    return x + z if shortcut else z


if __name__ == "__main__":
    c1, c2 = 8, 8                      # shortcut active (c1 == c2)
    N, H, W = 4, 16, 16                # 2 images packed per grid step -> grid=(2,)

    key = jax.random.PRNGKey(0)
    kx, kp = jax.random.split(key)
    x = jax.random.normal(kx, (N, c1, H, W), jnp.float32)
    params = init_ghost_bottleneck_params(kp, c1, c2)
    shortcut = c1 == c2

    roll_np_like = _roll_is_numpy_convention()

    fwd = jax.jit(functools.partial(
        ghost_bottleneck, shortcut=shortcut,
        images_per_step=2, roll_np_like=roll_np_like))
    out = jax.block_until_ready(fwd(x, params))

    assert out.shape == (N, c2, H, W), out.shape
    assert bool(jnp.all(jnp.isfinite(out)))

    # Numerical check against a plain XLA implementation of the same module.
    ref = ghost_bottleneck_reference(x, params, shortcut)
    err = float(jnp.max(jnp.abs(out - ref)))
    assert err < 1e-3, f"mismatch vs reference: max abs err = {err}"

    print("KERNEL_OK")
</pallas_src>

<mosaic_0001>
module attributes {stable_mosaic.version = 11 : i64} {
  func.func @k(%arg0: memref<8x128xf32, #tpu.memory_space<vmem>>, %arg1: memref<8x128xf32, #tpu.memory_space<vmem>>) attributes {dimension_semantics = [], scalar_prefetch = 0 : i64, scratch_operands = 0 : i64, tpu.core_type = #tpu.core_type<tc>} {
    %c0 = arith.constant 0 : index
    %c0_0 = arith.constant 0 : index
    %0 = vector.load %arg0[%c0, %c0_0] : memref<8x128xf32, #tpu.memory_space<vmem>>, vector<8x128xf32>
    %c1_i32 = arith.constant 1 : i32
    %1 = tpu.dynamic_rotate %0 by %c1_i32 dim 1 : vector<8x128xf32>, i32 -> vector<8x128xf32>
    %c0_1 = arith.constant 0 : index
    %c0_2 = arith.constant 0 : index
    %2 = vector.load %arg1[%c0_1, %c0_2] : memref<8x128xf32, #tpu.memory_space<vmem>>, vector<8x128xf32>
    tpu.vector_store %arg1[%c0_1, %c0_2], %1 {strides = array<i32>} : memref<8x128xf32, #tpu.memory_space<vmem>>, vector<8x128xf32>,
    return
  }
}

</mosaic_0001>

<bundles_post_ra>
// kernel: tpu_custom_call.1
= control target key start
LH: loop header
LB: loop body
LE: loop exit
PB: predicated region body
PF: predicated region fallthrough
CT: control target
= control target key end

     0   :  { %6 = vsyncpa [#allocation3], 0  ;;  %s128_s0 = inlined_call_operand.hbm [shape: f32[8,128], index: 0, kind: input, shape index: {}]   ;;  %s129_s1 = inlined_call_operand.hbm [shape: f32[8,128], index: 1, kind: output, shape index: {}]  }
   0x1   :  { %7 = vsyncpa [#allocation4], 0  ;;  %s91_s6 = smov [#allocation2]   ;;  %s43_s10 = scalar_lea.hbm %s128_s0, 128 }
   0x2   :  { %s14_s7 = sshll.u32 %s91_s6, 4  ;;  %p44_p0 = scmp.ne.s32.totalorder %s128_s0, %s43_s10  ;;  %s15_s7 = int_to_ptr.vmem [resolvable:$true] %s14_s7 }
   0x3   :  { %p47_p1 = scmp.lt.u32.totalorder %s43_s10, %s128_s0 }
   0x5   :  { %p49_p2 = pnand %p47_p1, %p44_p0 }
   0x7   :  { %52 = shalt.err (!%p49_p2)
}
   0x8   :  { %s53_s15 = scalar_lea.vmem %s15_s7, 128  ;;  %p58_p4 = scmp.lt.s32.totalorder %s15_s7, %s15_s7 }
   0x9   :  { %p54_p3 = scmp.ne.s32.totalorder %s15_s7, %s53_s15  ;;  %p59_p5 = scmp.lt.s32.totalorder %s53_s15, %s53_s15 }
   0xb   :  { %p60_p6 = por %p59_p5, %p58_p4 }
   0xd   :  { %p61_p7 = pnand %p60_p6, %p54_p3 }
   0xf   :  { %64 = shalt.err (!%p61_p7)
}
  0x10   :  { %17 = dma.hbm_to_vmem [thread:$0]  %s128_s0, 128, %s15_s7, [#allocation3]  }
  0x11   :  { %87 = dma.done.wait [#allocation3], 128  }
  0x12   :  { %88 = vsyncadd [#allocation3], 4294967168  ;;  %v21_v0 = vld [vmem:[#allocation2] sm:$0xff]  ;;  %s92_s18 = smov 1   ;;  %s93_s19 = smov [#allocation5]  }
  0x13   :  { %22 = vrot.lane.b32.xlu0 %v21_v0, %s92_s18  ;;  %s31_s20 = sshll.u32 %s93_s19, 4  ;;  %s32_s20 = int_to_ptr.vmem [resolvable:$true] %s31_s20 }
  0x14   :  { %s65_s21 = scalar_lea.vmem %s32_s20, 128  ;;  %p70_p9 = scmp.lt.s32.totalorder %s32_s20, %s32_s20 }
  0x15   :  { %p66_p8 = scmp.ne.s32.totalorder %s32_s20, %s65_s21  ;;  %p71_p10 = scmp.lt.s32.totalorder %s65_s21, %s65_s21 }
  0x17   :  { %p72_p11 = por %p71_p10, %p70_p9 }
  0x19   :  { %p73_p12 = pnand %p72_p11, %p66_p8 }
  0x85   :  { %v23_v1 = vpop.permute.xlu0 %22 }
  0x86   :  { %24 = vst [vmem:[#allocation5] sm:$0xff] %v23_v1 }
  0x87   :  { %76 = shalt.err (!%p73_p12)
}
  0x88   :  { %s77_s0 = scalar_lea.hbm %s129_s1, 128 }
  0x89   :  { %p78_p13 = scmp.ne.s32.totalorder %s129_s1, %s77_s0  ;;  %p81_p0 = scmp.lt.u32.totalorder %s77_s0, %s129_s1 }
  0x8b   :  { %p83_p1 = pnand %p81_p0, %p78_p13 }
  0x8d   :  { %86 = shalt.err (!%p83_p1)
}
  0x8e   :  { %34 = dma.vmem_to_hbm [thread:$0]  %s32_s20, 128, %s129_s1, [#allocation4]  }
  0x8f   :  { %89 = dma.done.wait [#allocation4], 128  }
  0x90   :  { %90 = vsyncadd [#allocation4], 4294967168 }
  0x91   :  { %38 = vsyncpa [#allocation3], 1 }
  0x92   :  { %39 = vsyncpa [#allocation4], 1 }

</bundles_post_ra>
